<compile_context>
chip_gen: v6e
topology: v6e:2x2x1
jax: 0.10.0
libtpu: 0.0.40
codegen_flags: <defaults>
</compile_context>

<pallas_src>
import jax
import jax.numpy as jnp
from jax import lax
from jax.experimental import pallas as pl
from jax.experimental.pallas import tpu as pltpu

EPS = 1e-5

# ---- packed-parameter layout -------------------------------------------------
# One (72, 128) f32 array.  Weight block i (Linear i+1, PyTorch layout
# (out_features, in_features)) occupies rows ROW_START[i] .. +out-1, columns
# [0, in).  The matching BatchNorm gamma / beta live in columns 126 / 127 of
# the same rows (already shaped (out, 1) for lane-broadcast).  Layer 5
# (Linear(4, 1)) stores its weight as a *column* at rows 64..67 of column 126
# and its bias at (64, 127), so the kernel reads it directly as a (4, 1)
# vector for the VPU multiply + sublane-reduce epilogue.
PACK_ROWS = 72
PACK_LANES = 128
ROW_START = (0, 32, 48, 56, 64)      # 8-aligned block starts
GAMMA_COL = 126
BETA_COL = 127
HIDDEN = (32, 16, 8, 4, 1)

# Un-tiled single-block kernel: x plus all per-layer (out, B) intermediates
# live in VMEM at once (~0.5 KiB / sample at n_inputs=16).  32K samples stays
# comfortably under the 32 MiB scoped-VMEM limit set below (v7x-safe).
MAX_BATCH = 32768


def init_params(key, n_inputs):
    """PyTorch-default-style init.

    Linear: W ~ U(-1/sqrt(fan_in), 1/sqrt(fan_in)), stored (out, in); biases
    likewise (all 5 layers, like the PyTorch module).  BatchNorm1d: gamma = 1,
    beta = 0.
    """
    dims = [n_inputs] + list(HIDDEN)
    p = {}
    for i in range(5):
        in_f, out_f = dims[i], dims[i + 1]
        key, kw, kb = jax.random.split(key, 3)
        bound = 1.0 / (in_f ** 0.5)
        p[f"W{i+1}"] = jax.random.uniform(
            kw, (out_f, in_f), jnp.float32, -bound, bound)
        p[f"b{i+1}"] = jax.random.uniform(
            kb, (out_f,), jnp.float32, -bound, bound)
    for i in range(4):
        out_f = dims[i + 1]
        p[f"gamma{i+1}"] = jnp.ones((out_f,), jnp.float32)
        p[f"beta{i+1}"] = jnp.zeros((out_f,), jnp.float32)
    return p


def pack_params(p, n_inputs):
    """Pack parameters into a single (72, 128) f32 array (one DMA).

    Biases b1..b4 are intentionally NOT packed: under train-mode BatchNorm a
    per-feature bias added before the mean subtraction cancels exactly, so
    only layer 5's bias affects the output.
    """
    assert n_inputs <= 126, "packing layout assumes n_inputs <= 126"
    dims = [n_inputs] + list(HIDDEN)
    P = jnp.zeros((PACK_ROWS, PACK_LANES), jnp.float32)
    for i in range(4):
        in_f, out_f = dims[i], dims[i + 1]
        r = ROW_START[i]
        P = P.at[r:r + out_f, 0:in_f].set(p[f"W{i+1}"])
        P = P.at[r:r + out_f, GAMMA_COL].set(p[f"gamma{i+1}"])
        P = P.at[r:r + out_f, BETA_COL].set(p[f"beta{i+1}"])
    r5 = ROW_START[4]
    P = P.at[r5:r5 + 4, GAMMA_COL].set(p["W5"][0, :])   # W5 as a (4,) column
    P = P.at[r5, BETA_COL].set(p["b5"][0])
    return P


def _gunn4_kernel(x_ref, p_ref, out_ref):
    # x_ref:   (B, n_inputs) batch-major (exactly as the caller holds it)
    # p_ref:   (72, 128) packed parameters
    # out_ref: (1, B) lane-dense output row
    B, n_in = x_ref.shape
    dims = [n_in] + list(HIDDEN)
    inv_b = 1.0 / B

    h = None
    for i in range(4):
        in_f, out_f = dims[i], dims[i + 1]
        r = ROW_START[i]
        # Read parameter slices directly off the ref (no big live packed value).
        W = p_ref[r:r + out_f, 0:in_f]                     # (out, in)
        g = p_ref[r:r + out_f, GAMMA_COL:GAMMA_COL + 1]    # (out, 1)
        be = p_ref[r:r + out_f, BETA_COL:BETA_COL + 1]     # (out, 1)

        if i == 0:
            # Contract axis 1 of both operands: (out,in) x (B,in) -> (out,B).
            # Produces the feature-major activation directly -> no host/HBM
            # transpose of x needed.
            z = lax.dot_general(W, x_ref[...], (((1,), (1,)), ((), ())),
                                preferred_element_type=jnp.float32)
        else:
            z = jnp.dot(W, h, preferred_element_type=jnp.float32)  # (out, B)

        # Train-mode BatchNorm over the batch (lane) axis, one sweep:
        # biased variance via E[z^2] - mean^2 (clamped against fp
        # cancellation; for inputs with extreme mean/spread a two-pass
        # formula would be safer, at one extra (out,B) VPU pass per layer).
        mean = jnp.sum(z, axis=1, keepdims=True) * inv_b           # (out, 1)
        ex2 = jnp.sum(z * z, axis=1, keepdims=True) * inv_b        # (out, 1)
        var = jnp.maximum(ex2 - mean * mean, 0.0)

        # Fused BN affine: one scale/shift FMA + ReLU on the full-width tile.
        scale = g * lax.rsqrt(var + EPS)                           # (out, 1)
        shift = be - mean * scale                                  # (out, 1)
        h = jnp.maximum(z * scale + shift, 0.0)                    # (out, B)

    # Layer 5: Linear(4, 1) as VPU multiply + sublane reduce (no 5th MXU dot).
    r5 = ROW_START[4]
    w5 = p_ref[r5:r5 + 4, GAMMA_COL:GAMMA_COL + 1]                 # (4, 1)
    b5 = p_ref[r5:r5 + 1, BETA_COL:BETA_COL + 1]                   # (1, 1)
    out_ref[...] = jnp.sum(h * w5, axis=0, keepdims=True) + b5


def gunn4_forward(x, packed):
    """x: (B, n_inputs) float32; packed: (72, 128) packed params.  Returns (B,)."""
    B, _ = x.shape
    # PyTorch BatchNorm1d raises in train mode for a batch of 1; match that
    # precondition rather than silently returning rsqrt(eps)-scaled values.
    assert B >= 2, "train-mode BatchNorm1d requires batch >= 2"
    assert B <= MAX_BATCH, "un-tiled kernel: batch too large for VMEM (see TODO)"

    vmem = pl.BlockSpec(memory_space=pltpu.MemorySpace.VMEM)
    out = pl.pallas_call(
        _gunn4_kernel,
        out_shape=jax.ShapeDtypeStruct((1, B), jnp.float32),
        in_specs=[vmem, vmem],
        out_specs=vmem,
        compiler_params=pltpu.CompilerParams(
            vmem_limit_bytes=32 * 1024 * 1024),
    )(x, packed)
    return out[0, :]  # matches PyTorch `X.squeeze()` for B >= 2


def gunn4_reference(x, p):
    """Pure-JAX reference: full PyTorch semantics incl. all Linear biases and
    the canonical two-pass BN formula (validates the kernel's bias-cancellation
    and one-pass-variance shortcuts)."""
    h = x
    for i in range(4):
        h = h @ p[f"W{i+1}"].T + p[f"b{i+1}"]
        mean = jnp.mean(h, axis=0, keepdims=True)
        var = jnp.mean((h - mean) ** 2, axis=0, keepdims=True)
        h = (h - mean) * lax.rsqrt(var + EPS)
        h = h * p[f"gamma{i+1}"] + p[f"beta{i+1}"]
        h = jnp.maximum(h, 0.0)
    y = h @ p["W5"].T + p["b5"]
    return jnp.squeeze(y)


if __name__ == "__main__":
    key = jax.random.PRNGKey(0)
    n_inputs = 16

    key, kp = jax.random.split(key)
    params = init_params(kp, n_inputs)
    packed = pack_params(params, n_inputs)

    # B=256: lane-dense (multiple of 128) path; B=96: ragged-lane path.
    for batch in (256, 96):
        key, kx = jax.random.split(key)
        x = jax.random.normal(kx, (batch, n_inputs), jnp.float32)

        y = gunn4_forward(x, packed)
        jax.block_until_ready(y)
        assert y.shape == (batch,)

        y_ref = gunn4_reference(x, params)
        assert jnp.allclose(y, y_ref, rtol=1e-4, atol=1e-4), (batch, y, y_ref)

    print("KERNEL_OK")
</pallas_src>

<mosaic_0001>
module attributes {stable_mosaic.version = 11 : i64} {
  func.func @_gunn4_kernel(%arg0: memref<256x16xf32, #tpu.memory_space<vmem>>, %arg1: memref<72x128xf32, #tpu.memory_space<vmem>>, %arg2: memref<1x256xf32, #tpu.memory_space<vmem>>) attributes {dimension_semantics = [], scalar_prefetch = 0 : i64, scratch_operands = 0 : i64, tpu.core_type = #tpu.core_type<tc>} {
    %c0 = arith.constant 0 : index
    %c0_0 = arith.constant 0 : index
    %0 = vector.load %arg1[%c0, %c0_0] : memref<72x128xf32, #tpu.memory_space<vmem>>, vector<32x16xf32>
    %c0_1 = arith.constant 0 : index
    %c126 = arith.constant 126 : index
    %1 = vector.load %arg1[%c0_1, %c126] : memref<72x128xf32, #tpu.memory_space<vmem>>, vector<32x1xf32>
    %c0_2 = arith.constant 0 : index
    %c127 = arith.constant 127 : index
    %2 = vector.load %arg1[%c0_2, %c127] : memref<72x128xf32, #tpu.memory_space<vmem>>, vector<32x1xf32>
    %c0_3 = arith.constant 0 : index
    %c0_4 = arith.constant 0 : index
    %3 = vector.load %arg0[%c0_3, %c0_4] : memref<256x16xf32, #tpu.memory_space<vmem>>, vector<256x16xf32>
    %cst = arith.constant dense<0.000000e+00> : vector<32x256xf32>
    %4 = tpu.matmul %0, %3, %cst {dimension_numbers = #tpu.dot_dimension_numbers<[1], [1], [0], [0], [0, 0, 1, 0], [], []>} : vector<32x16xf32>, vector<256x16xf32>, vector<32x256xf32> -> vector<32x256xf32>
    %cst_5 = arith.constant dense<0.000000e+00> : vector<32xf32>
    %5 = vector.multi_reduction <add>, %4, %cst_5 [1] : vector<32x256xf32> to vector<32xf32>
    %6 = vector.shape_cast %5 : vector<32xf32> to vector<32x1xf32>
    %cst_6 = arith.constant 3.906250e-03 : f32
    %7 = vector.broadcast %cst_6 : f32 to vector<32x1xf32>
    %8 = arith.mulf %6, %7 : vector<32x1xf32>
    %9 = arith.mulf %4, %4 : vector<32x256xf32>
    %cst_7 = arith.constant dense<0.000000e+00> : vector<32xf32>
    %10 = vector.multi_reduction <add>, %9, %cst_7 [1] : vector<32x256xf32> to vector<32xf32>
    %11 = vector.shape_cast %10 : vector<32xf32> to vector<32x1xf32>
    %cst_8 = arith.constant 3.906250e-03 : f32
    %12 = vector.broadcast %cst_8 : f32 to vector<32x1xf32>
    %13 = arith.mulf %11, %12 : vector<32x1xf32>
    %14 = arith.mulf %8, %8 : vector<32x1xf32>
    %15 = arith.subf %13, %14 : vector<32x1xf32>
    %cst_9 = arith.constant 0.000000e+00 : f32
    %16 = vector.broadcast %cst_9 : f32 to vector<32x1xf32>
    %17 = arith.maximumf %15, %16 : vector<32x1xf32>
    %cst_10 = arith.constant 9.99999974E-6 : f32
    %18 = vector.broadcast %cst_10 : f32 to vector<32x1xf32>
    %19 = arith.addf %17, %18 : vector<32x1xf32>
    %20 = math.rsqrt %19 : vector<32x1xf32>
    %21 = arith.mulf %1, %20 : vector<32x1xf32>
    %22 = arith.mulf %8, %21 : vector<32x1xf32>
    %23 = arith.subf %2, %22 : vector<32x1xf32>
    %24 = vector.broadcast %21 : vector<32x1xf32> to vector<32x256xf32>
    %25 = arith.mulf %4, %24 : vector<32x256xf32>
    %26 = vector.broadcast %23 : vector<32x1xf32> to vector<32x256xf32>
    %27 = arith.addf %25, %26 : vector<32x256xf32>
    %cst_11 = arith.constant 0.000000e+00 : f32
    %28 = vector.broadcast %cst_11 : f32 to vector<32x256xf32>
    %29 = arith.maximumf %27, %28 : vector<32x256xf32>
    %c32 = arith.constant 32 : index
    %c0_12 = arith.constant 0 : index
    %30 = vector.load %arg1[%c32, %c0_12] : memref<72x128xf32, #tpu.memory_space<vmem>>, vector<16x32xf32>
    %c32_13 = arith.constant 32 : index
    %c126_14 = arith.constant 126 : index
    %31 = vector.load %arg1[%c32_13, %c126_14] : memref<72x128xf32, #tpu.memory_space<vmem>>, vector<16x1xf32>
    %c32_15 = arith.constant 32 : index
    %c127_16 = arith.constant 127 : index
    %32 = vector.load %arg1[%c32_15, %c127_16] : memref<72x128xf32, #tpu.memory_space<vmem>>, vector<16x1xf32>
    %cst_17 = arith.constant dense<0.000000e+00> : vector<16x256xf32>
    %33 = tpu.matmul %30, %29, %cst_17 {dimension_numbers = #tpu.dot_dimension_numbers<[1], [0], [0], [1], [0, 0, 1, 1], [], []>} : vector<16x32xf32>, vector<32x256xf32>, vector<16x256xf32> -> vector<16x256xf32>
    %cst_18 = arith.constant dense<0.000000e+00> : vector<16xf32>
    %34 = vector.multi_reduction <add>, %33, %cst_18 [1] : vector<16x256xf32> to vector<16xf32>
    %35 = vector.shape_cast %34 : vector<16xf32> to vector<16x1xf32>
    %cst_19 = arith.constant 3.906250e-03 : f32
    %36 = vector.broadcast %cst_19 : f32 to vector<16x1xf32>
    %37 = arith.mulf %35, %36 : vector<16x1xf32>
    %38 = arith.mulf %33, %33 : vector<16x256xf32>
    %cst_20 = arith.constant dense<0.000000e+00> : vector<16xf32>
    %39 = vector.multi_reduction <add>, %38, %cst_20 [1] : vector<16x256xf32> to vector<16xf32>
    %40 = vector.shape_cast %39 : vector<16xf32> to vector<16x1xf32>
    %cst_21 = arith.constant 3.906250e-03 : f32
    %41 = vector.broadcast %cst_21 : f32 to vector<16x1xf32>
    %42 = arith.mulf %40, %41 : vector<16x1xf32>
    %43 = arith.mulf %37, %37 : vector<16x1xf32>
    %44 = arith.subf %42, %43 : vector<16x1xf32>
    %cst_22 = arith.constant 0.000000e+00 : f32
    %45 = vector.broadcast %cst_22 : f32 to vector<16x1xf32>
    %46 = arith.maximumf %44, %45 : vector<16x1xf32>
    %cst_23 = arith.constant 9.99999974E-6 : f32
    %47 = vector.broadcast %cst_23 : f32 to vector<16x1xf32>
    %48 = arith.addf %46, %47 : vector<16x1xf32>
    %49 = math.rsqrt %48 : vector<16x1xf32>
    %50 = arith.mulf %31, %49 : vector<16x1xf32>
    %51 = arith.mulf %37, %50 : vector<16x1xf32>
    %52 = arith.subf %32, %51 : vector<16x1xf32>
    %53 = vector.broadcast %50 : vector<16x1xf32> to vector<16x256xf32>
    %54 = arith.mulf %33, %53 : vector<16x256xf32>
    %55 = vector.broadcast %52 : vector<16x1xf32> to vector<16x256xf32>
    %56 = arith.addf %54, %55 : vector<16x256xf32>
    %cst_24 = arith.constant 0.000000e+00 : f32
    %57 = vector.broadcast %cst_24 : f32 to vector<16x256xf32>
    %58 = arith.maximumf %56, %57 : vector<16x256xf32>
    %c48 = arith.constant 48 : index
    %c0_25 = arith.constant 0 : index
    %59 = vector.load %arg1[%c48, %c0_25] : memref<72x128xf32, #tpu.memory_space<vmem>>, vector<8x16xf32>
    %c48_26 = arith.constant 48 : index
    %c126_27 = arith.constant 126 : index
    %60 = vector.load %arg1[%c48_26, %c126_27] : memref<72x128xf32, #tpu.memory_space<vmem>>, vector<8x1xf32>
    %c48_28 = arith.constant 48 : index
    %c127_29 = arith.constant 127 : index
    %61 = vector.load %arg1[%c48_28, %c127_29] : memref<72x128xf32, #tpu.memory_space<vmem>>, vector<8x1xf32>
    %cst_30 = arith.constant dense<0.000000e+00> : vector<8x256xf32>
    %62 = tpu.matmul %59, %58, %cst_30 {dimension_numbers = #tpu.dot_dimension_numbers<[1], [0], [0], [1], [0, 0, 1, 1], [], []>} : vector<8x16xf32>, vector<16x256xf32>, vector<8x256xf32> -> vector<8x256xf32>
    %cst_31 = arith.constant dense<0.000000e+00> : vector<8xf32>
    %63 = vector.multi_reduction <add>, %62, %cst_31 [1] : vector<8x256xf32> to vector<8xf32>
    %64 = vector.shape_cast %63 : vector<8xf32> to vector<8x1xf32>
    %cst_32 = arith.constant 3.906250e-03 : f32
    %65 = vector.broadcast %cst_32 : f32 to vector<8x1xf32>
    %66 = arith.mulf %64, %65 : vector<8x1xf32>
    %67 = arith.mulf %62, %62 : vector<8x256xf32>
    %cst_33 = arith.constant dense<0.000000e+00> : vector<8xf32>
    %68 = vector.multi_reduction <add>, %67, %cst_33 [1] : vector<8x256xf32> to vector<8xf32>
    %69 = vector.shape_cast %68 : vector<8xf32> to vector<8x1xf32>
    %cst_34 = arith.constant 3.906250e-03 : f32
    %70 = vector.broadcast %cst_34 : f32 to vector<8x1xf32>
    %71 = arith.mulf %69, %70 : vector<8x1xf32>
    %72 = arith.mulf %66, %66 : vector<8x1xf32>
    %73 = arith.subf %71, %72 : vector<8x1xf32>
    %cst_35 = arith.constant 0.000000e+00 : f32
    %74 = vector.broadcast %cst_35 : f32 to vector<8x1xf32>
    %75 = arith.maximumf %73, %74 : vector<8x1xf32>
    %cst_36 = arith.constant 9.99999974E-6 : f32
    %76 = vector.broadcast %cst_36 : f32 to vector<8x1xf32>
    %77 = arith.addf %75, %76 : vector<8x1xf32>
    %78 = math.rsqrt %77 : vector<8x1xf32>
    %79 = arith.mulf %60, %78 : vector<8x1xf32>
    %80 = arith.mulf %66, %79 : vector<8x1xf32>
    %81 = arith.subf %61, %80 : vector<8x1xf32>
    %82 = vector.broadcast %79 : vector<8x1xf32> to vector<8x256xf32>
    %83 = arith.mulf %62, %82 : vector<8x256xf32>
    %84 = vector.broadcast %81 : vector<8x1xf32> to vector<8x256xf32>
    %85 = arith.addf %83, %84 : vector<8x256xf32>
    %cst_37 = arith.constant 0.000000e+00 : f32
    %86 = vector.broadcast %cst_37 : f32 to vector<8x256xf32>
    %87 = arith.maximumf %85, %86 : vector<8x256xf32>
    %c56 = arith.constant 56 : index
    %c0_38 = arith.constant 0 : index
    %88 = vector.load %arg1[%c56, %c0_38] : memref<72x128xf32, #tpu.memory_space<vmem>>, vector<4x8xf32>
    %c56_39 = arith.constant 56 : index
    %c126_40 = arith.constant 126 : index
    %89 = vector.load %arg1[%c56_39, %c126_40] : memref<72x128xf32, #tpu.memory_space<vmem>>, vector<4x1xf32>
    %c56_41 = arith.constant 56 : index
    %c127_42 = arith.constant 127 : index
    %90 = vector.load %arg1[%c56_41, %c127_42] : memref<72x128xf32, #tpu.memory_space<vmem>>, vector<4x1xf32>
    %cst_43 = arith.constant dense<0.000000e+00> : vector<4x256xf32>
    %91 = tpu.matmul %88, %87, %cst_43 {dimension_numbers = #tpu.dot_dimension_numbers<[1], [0], [0], [1], [0, 0, 1, 1], [], []>} : vector<4x8xf32>, vector<8x256xf32>, vector<4x256xf32> -> vector<4x256xf32>
    %cst_44 = arith.constant dense<0.000000e+00> : vector<4xf32>
    %92 = vector.multi_reduction <add>, %91, %cst_44 [1] : vector<4x256xf32> to vector<4xf32>
    %93 = vector.shape_cast %92 : vector<4xf32> to vector<4x1xf32>
    %cst_45 = arith.constant 3.906250e-03 : f32
    %94 = vector.broadcast %cst_45 : f32 to vector<4x1xf32>
    %95 = arith.mulf %93, %94 : vector<4x1xf32>
    %96 = arith.mulf %91, %91 : vector<4x256xf32>
    %cst_46 = arith.constant dense<0.000000e+00> : vector<4xf32>
    %97 = vector.multi_reduction <add>, %96, %cst_46 [1] : vector<4x256xf32> to vector<4xf32>
    %98 = vector.shape_cast %97 : vector<4xf32> to vector<4x1xf32>
    %cst_47 = arith.constant 3.906250e-03 : f32
    %99 = vector.broadcast %cst_47 : f32 to vector<4x1xf32>
    %100 = arith.mulf %98, %99 : vector<4x1xf32>
    %101 = arith.mulf %95, %95 : vector<4x1xf32>
    %102 = arith.subf %100, %101 : vector<4x1xf32>
    %cst_48 = arith.constant 0.000000e+00 : f32
    %103 = vector.broadcast %cst_48 : f32 to vector<4x1xf32>
    %104 = arith.maximumf %102, %103 : vector<4x1xf32>
    %cst_49 = arith.constant 9.99999974E-6 : f32
    %105 = vector.broadcast %cst_49 : f32 to vector<4x1xf32>
    %106 = arith.addf %104, %105 : vector<4x1xf32>
    %107 = math.rsqrt %106 : vector<4x1xf32>
    %108 = arith.mulf %89, %107 : vector<4x1xf32>
    %109 = arith.mulf %95, %108 : vector<4x1xf32>
    %110 = arith.subf %90, %109 : vector<4x1xf32>
    %111 = vector.broadcast %108 : vector<4x1xf32> to vector<4x256xf32>
    %112 = arith.mulf %91, %111 : vector<4x256xf32>
    %113 = vector.broadcast %110 : vector<4x1xf32> to vector<4x256xf32>
    %114 = arith.addf %112, %113 : vector<4x256xf32>
    %cst_50 = arith.constant 0.000000e+00 : f32
    %115 = vector.broadcast %cst_50 : f32 to vector<4x256xf32>
    %116 = arith.maximumf %114, %115 : vector<4x256xf32>
    %c64 = arith.constant 64 : index
    %c126_51 = arith.constant 126 : index
    %117 = vector.load %arg1[%c64, %c126_51] : memref<72x128xf32, #tpu.memory_space<vmem>>, vector<4x1xf32>
    %c64_52 = arith.constant 64 : index
    %c127_53 = arith.constant 127 : index
    %118 = vector.load %arg1[%c64_52, %c127_53] : memref<72x128xf32, #tpu.memory_space<vmem>>, vector<1x1xf32>
    %119 = vector.broadcast %117 : vector<4x1xf32> to vector<4x256xf32>
    %120 = arith.mulf %116, %119 : vector<4x256xf32>
    %cst_54 = arith.constant dense<0.000000e+00> : vector<256xf32>
    %121 = vector.multi_reduction <add>, %120, %cst_54 [0] : vector<4x256xf32> to vector<256xf32>
    %122 = vector.shape_cast %121 : vector<256xf32> to vector<1x256xf32>
    %123 = vector.broadcast %118 : vector<1x1xf32> to vector<1x256xf32>
    %124 = arith.addf %122, %123 : vector<1x256xf32>
    %c0_55 = arith.constant 0 : index
    %c0_56 = arith.constant 0 : index
    %125 = vector.load %arg2[%c0_55, %c0_56] : memref<1x256xf32, #tpu.memory_space<vmem>>, vector<1x256xf32>
    tpu.vector_store %arg2[%c0_55, %c0_56], %124 {strides = array<i32>} : memref<1x256xf32, #tpu.memory_space<vmem>>, vector<1x256xf32>,
    return
  }
}

</mosaic_0001>

<bundles_post_ra>
// kernel: tpu_custom_call.1
= control target key start
LH: loop header
LB: loop body
LE: loop exit
PB: predicated region body
PF: predicated region fallthrough
CT: control target
= control target key end

     0   :  { %vm48_vm0 = vcmask 130048   ;;  %s1284_s0 = inlined_call_operand.vmem [shape: f32[256,16], index: 0, kind: input, shape index: {}]   ;;  %s1285_s1 = inlined_call_operand.vmem [shape: f32[72,128], index: 1, kind: input, shape index: {}]   ;;  %s1286_s2 = inlined_call_operand.hbm [shape: f32[1,256], index: 2, kind: output, shape index: {}]  }
   0x1   :  { %v47_v0 = vld [vmem:[%s1284_s0 + $0xf8] sm:$0xff]  ;;  %v46_v2 = vld [vmem:[%s1284_s0 + $0xf0] sm:$0xff]  ;;  %v45_v4 = vld [vmem:[%s1284_s0 + $0xe8] sm:$0xff] }
   0x2   :  { %v31_v1 = vld [vmem:[%s1284_s0 + $0x78] sm:$0xff]  ;;  %899 = vmatprep.subr.msk.mxu0 %vm48_vm0, %v47_v0  ;;  %v30_v3 = vld [vmem:[%s1284_s0 + $0x70] sm:$0xff]  ;;  %v29_v5 = vld [vmem:[%s1284_s0 + $0x68] sm:$0xff] }
   0x3   :  { %900 = vmatpush3.xpose.msk.msra.mxu0 %vm48_vm0, %v31_v1  ;;  %v44_v6 = vld [vmem:[%s1284_s0 + $0xe0] sm:$0xff]  ;;  %v43_v9 = vld [vmem:[%s1284_s0 + $0xd8] sm:$0xff] }
   0x4   :  { %901 = vmatprep.subr.msk.mxu0 %vm48_vm0, %v46_v2  ;;  %v1044_v7 = vld [vmem:[%s1285_s1] sm:$0xff] }
   0x5   :  { %v28_v8 = vld [vmem:[%s1284_s0 + $0x60] sm:$0xff]  ;;  %931 = vmatprep.mubr.msk.f32.mxu0 %vm48_vm0, %v1044_v7 }
   0x7   :  { %902 = vmatpush3.xpose.msk.msra.mxu0 %vm48_vm0, %v30_v3 }
   0x8   :  { %903 = vmatprep.subr.msk.mxu0 %vm48_vm0, %v45_v4 }
   0xb   :  { %904 = vmatpush3.xpose.msk.msra.mxu0 %vm48_vm0, %v29_v5 }
   0xc   :  { %905 = vmatprep.subr.msk.mxu0 %vm48_vm0, %v44_v6 }
   0xd   :  { %7 = vsyncpa [#allocation3], 0  ;;  %v27_v10 = vld [vmem:[%s1284_s0 + $0x58] sm:$0xff]  ;;  %v42_v11 = vld [vmem:[%s1284_s0 + $0xd0] sm:$0xff]  ;;  %v993_v60 = vmov 126   ;;  %s994_s24 = smov 1  }
   0xe   :  { %v26_v12 = vld [vmem:[%s1284_s0 + $0x50] sm:$0xff]  ;;  %v41_v13 = vld [vmem:[%s1284_s0 + $0xc8] sm:$0xff]  ;;  %v40_v15 = vld [vmem:[%s1284_s0 + $0xc0] sm:$0xff]  ;;  %945 = vset.pattern.permute.xlu0 %v993_v60  ;;  %946 = vset.pattern.permute.xlu1 %v993_v60  ;;  %vm400_vm1 = vcmask 261120   ;;  %vm674_vm2 = vcmask 64512   ;;  %vm749_vm3 = vcmask 1043456  }
   0xf   :  { %906 = vmatpush3.xpose.msk.msra.mxu0 %vm48_vm0, %v28_v8  ;;  %v25_v14 = vld [vmem:[%s1284_s0 + $0x48] sm:$0xff]  ;;  %v24_v16 = vld [vmem:[%s1284_s0 + $0x40] sm:$0xff]  ;;  %v39_v17 = vld [vmem:[%s1284_s0 + $0xb8] sm:$0xff] }
  0x10   :  { %907 = vmatprep.subr.msk.mxu0 %vm48_vm0, %v43_v9  ;;  %v23_v18 = vld [vmem:[%s1284_s0 + $0x38] sm:$0xff]  ;;  %v38_v19 = vld [vmem:[%s1284_s0 + $0xb0] sm:$0xff]  ;;  %v37_v21 = vld [vmem:[%s1284_s0 + $0xa8] sm:$0xff] }
  0x11   :  { %v22_v20 = vld [vmem:[%s1284_s0 + $0x30] sm:$0xff]  ;;  %v21_v22 = vld [vmem:[%s1284_s0 + $0x28] sm:$0xff]  ;;  %v36_v23 = vld [vmem:[%s1284_s0 + $0xa0] sm:$0xff] }
  0x12   :  { %v20_v24 = vld [vmem:[%s1284_s0 + $0x20] sm:$0xff]  ;;  %v35_v25 = vld [vmem:[%s1284_s0 + $0x98] sm:$0xff]  ;;  %v34_v27 = vld [vmem:[%s1284_s0 + $0x90] sm:$0xff] }
  0x13   :  { %908 = vmatpush3.xpose.msk.msra.mxu0 %vm48_vm0, %v27_v10  ;;  %v19_v26 = vld [vmem:[%s1284_s0 + $0x18] sm:$0xff]  ;;  %v18_v28 = vld [vmem:[%s1284_s0 + $0x10] sm:$0xff]  ;;  %v33_v29 = vld [vmem:[%s1284_s0 + $0x88] sm:$0xff] }
  0x14   :  { %909 = vmatprep.subr.msk.mxu0 %vm48_vm0, %v42_v11  ;;  %v17_v30 = vld [vmem:[%s1284_s0 + $0x8] sm:$0xff]  ;;  %v32_v31 = vld [vmem:[%s1284_s0 + $0x80] sm:$0xff]  ;;  %v1161_v34 = vld [vmem:[%s1285_s1 + $0x10] sm:$0xff] }
  0x15   :  { %v16_v32 = vld [vmem:[%s1284_s0] sm:$0xff]  ;;  %v1152_v33 = vld [vmem:[%s1285_s1 + $0x8] sm:$0xff]  ;;  %v1170_v35 = vld [vmem:[%s1285_s1 + $0x18] sm:$0xff] }
  0x17   :  { %910 = vmatpush3.xpose.msk.msra.mxu0 %vm48_vm0, %v26_v12 }
  0x18   :  { %911 = vmatprep.subr.msk.mxu0 %vm48_vm0, %v41_v13 }
  0x1b   :  { %912 = vmatpush3.xpose.msk.msra.mxu0 %vm48_vm0, %v25_v14 }
  0x1c   :  { %913 = vmatprep.subr.msk.mxu0 %vm48_vm0, %v40_v15 }
  0x1f   :  { %914 = vmatpush3.xpose.msk.msra.mxu0 %vm48_vm0, %v24_v16 }
  0x20   :  { %915 = vmatprep.subr.msk.mxu0 %vm48_vm0, %v39_v17 }
  0x23   :  { %916 = vmatpush3.xpose.msk.msra.mxu0 %vm48_vm0, %v23_v18 }
  0x24   :  { %917 = vmatprep.subr.msk.mxu0 %vm48_vm0, %v38_v19 }
  0x27   :  { %918 = vmatpush3.xpose.msk.msra.mxu0 %vm48_vm0, %v22_v20 }
  0x28   :  { %919 = vmatprep.subr.msk.mxu0 %vm48_vm0, %v37_v21 }
  0x2b   :  { %920 = vmatpush3.xpose.msk.msra.mxu0 %vm48_vm0, %v21_v22 }
  0x2c   :  { %921 = vmatprep.subr.msk.mxu0 %vm48_vm0, %v36_v23 }
  0x2f   :  { %922 = vmatpush3.xpose.msk.msra.mxu0 %vm48_vm0, %v20_v24 }
  0x30   :  { %923 = vmatprep.subr.msk.mxu0 %vm48_vm0, %v35_v25 }
  0x33   :  { %924 = vmatpush3.xpose.msk.msra.mxu0 %vm48_vm0, %v19_v26 }
  0x34   :  { %925 = vmatprep.subr.msk.mxu0 %vm48_vm0, %v34_v27 }
  0x37   :  { %926 = vmatpush3.xpose.msk.msra.mxu0 %vm48_vm0, %v18_v28 }
  0x38   :  { %927 = vmatprep.subr.msk.mxu0 %vm48_vm0, %v33_v29 }
  0x3b   :  { %928 = vmatpush3.xpose.msk.msra.mxu0 %vm48_vm0, %v17_v30 }
  0x3c   :  { %929 = vmatprep.subr.msk.mxu0 %vm48_vm0, %v32_v31 }
  0x3f   :  { %930 = vmatpush3.xpose.msk.msra.mxu0 %vm48_vm0, %v16_v32 }
  0x42   :  { %932 = vmatmul.mubr.msk.f32.vlgmr.msra.gmra.mxu0 %vm48_vm0, %v1044_v7 }
  0x43   :  { %933 = vmatprep.mubr.msk.f32.mxu0 %vm48_vm0, %v1152_v33 }
  0x46   :  { %934 = vmatmul.mubr.msk.f32.gmra.mxu0 %vm48_vm0, %v1152_v33 }
  0x47   :  { %935 = vmatprep.mubr.msk.f32.mxu0 %vm48_vm0, %v1161_v34 }
  0x4a   :  { %936 = vmatmul.mubr.msk.f32.gmra.mxu0 %vm48_vm0, %v1161_v34 }
  0x4b   :  { %937 = vmatprep.mubr.msk.f32.mxu0 %vm48_vm0, %v1170_v35 }
  0x4e   :  { %938 = vmatmul.mubr.msk.f32.gmra.mxu0 %vm48_vm0, %v1170_v35 }
 0x102   :  { %v1178_v36 = vpop.f32.mrf.mxu0 }
 0x103   :  { %v262_v58 = vmul.f32 %v1178_v36, %v1178_v36 }
 0x104   :  { %v1180_v37 = vpop.f32.mrf.mxu0 }
 0x105   :  { %v246_v54 = vadd.f32 %v1180_v37, %v1178_v36  ;;  %v263_v56 = vmul.f32 %v1180_v37, %v1180_v37 }
 0x106   :  { %v1182_v38 = vpop.f32.mrf.mxu0 }
 0x107   :  { %v264_v55 = vmul.f32 %v1182_v38, %v1182_v38  ;;  %v270_v59 = vadd.f32 %v263_v56, %v262_v58 }
 0x108   :  { %v1184_v39 = vpop.f32.mrf.mxu0 }
 0x109   :  { %v249_v40 = vadd.f32 %v1184_v39, %v1182_v38  ;;  %v265_v53 = vmul.f32 %v1184_v39, %v1184_v39 }
 0x10a   :  { %v1188_v41 = vpop.f32.mrf.mxu0 }
 0x10b   :  { %250 = vadd.xlane.f32.xlu1 %v249_v40  ;;  %v266_v51 = vmul.f32 %v1188_v41, %v1188_v41  ;;  %v273_v57 = vadd.f32 %v265_v53, %v264_v55  ;;  %v995_v53 = vmov 127  }
 0x10c   :  { %v1190_v42 = vpop.f32.mrf.mxu0 }
 0x10d   :  { %v252_v43 = vadd.f32 %v1190_v42, %v1188_v41  ;;  %v267_v49 = vmul.f32 %v1190_v42, %v1190_v42 }
 0x10e   :  { %v1194_v44 = vpop.f32.mrf.mxu0 }
 0x10f   :  { %253 = vadd.xlane.f32.xlu0 %v252_v43  ;;  %v268_v48 = vmul.f32 %v1194_v44, %v1194_v44  ;;  %v276_v52 = vadd.f32 %v267_v49, %v266_v51 }
 0x110   :  { %v1196_v45 = vpop.f32.mrf.mxu0 }
 0x111   :  { %v269_v46 = vmul.f32 %v1196_v45, %v1196_v45  ;;  %v255_v47 = vadd.f32 %v1196_v45, %v1194_v44 }
 0x113   :  { %256 = vadd.xlane.f32.xlu0 %v255_v47  ;;  %v279_v50 = vadd.f32 %v269_v46, %v268_v48 }
 0x115   :  { %280 = vadd.xlane.f32.xlu1 %v279_v50 }
 0x117   :  { %277 = vadd.xlane.f32.xlu0 %v276_v52 }
 0x119   :  { %247 = vadd.xlane.f32.xlu1 %v246_v54 }
 0x11b   :  { %274 = vadd.xlane.f32.xlu0 %v273_v57 }
 0x11d   :  { %271 = vadd.xlane.f32.xlu1 %v270_v59 }
 0x194   :  { %v251_v62 = vpop.xlane.xlu1 %250 }
 0x195   :  { %v259_v6 = vmul.f32 0.00390625, %v251_v62 }
 0x197   :  { %v287_v16 = vmul.f32 %v259_v6, %v259_v6 }
 0x198   :  { %v254_v61 = vpop.xlane.xlu0 %253 }
 0x199   :  { %v260_v0 = vmul.f32 0.00390625, %v254_v61 }
 0x19b   :  { %v288_v8 = vmul.f32 %v260_v0, %v260_v0 }
 0x19c   :  { %v257_v63 = vpop.xlane.xlu0 %256 }
 0x19d   :  { %v261_v1 = vmul.f32 0.00390625, %v257_v63  ;;  %v996_v63 = vmov 0.0  }
 0x19e   :  { %v281_v2 = vpop.xlane.xlu1 %280  ;;  %471 = vmatprep.mubr.f32.mxu1 %v996_v63 }
 0x19f   :  { %v289_v3 = vmul.f32 %v261_v1, %v261_v1  ;;  %v285_v4 = vmul.f32 0.00390625, %v281_v2 }
 0x1a0   :  { %v278_v5 = vpop.xlane.xlu0 %277 }
 0x1a1   :  { %v293_v9 = vsub.f32 %v285_v4, %v289_v3  ;;  %v284_v10 = vmul.f32 0.00390625, %v278_v5 }
 0x1a2   :  { %v248_v11 = vpop.xlane.xlu1 %247 }
 0x1a3   :  { %v297_v12 = vmax.f32 %v293_v9, 0.0  ;;  %v292_v13 = vsub.f32 %v284_v10, %v288_v8  ;;  %v258_v14 = vmul.f32 0.00390625, %v248_v11 }
 0x1a4   :  { %v275_v15 = vpop.xlane.xlu0 %274 }
 0x1a5   :  { %v301_v17 = vadd.f32 1e-05, %v297_v12  ;;  %v296_v18 = vmax.f32 %v292_v13, 0.0  ;;  %v283_v19 = vmul.f32 0.00390625, %v275_v15  ;;  %v286_v20 = vmul.f32 %v258_v14, %v258_v14 }
 0x1a6   :  { %v272_v21 = vpop.xlane.xlu1 %271 }
 0x1a7   :  { %955 = vrsqrt.f32 %v301_v17  ;;  %v300_v22 = vadd.f32 1e-05, %v296_v18  ;;  %v291_v23 = vsub.f32 %v283_v19, %v287_v16  ;;  %v282_v24 = vmul.f32 0.00390625, %v272_v21 }
 0x1a9   :  { %957 = vrsqrt.f32 %v300_v22  ;;  %v295_v25 = vmax.f32 %v291_v23, 0.0  ;;  %v290_v26 = vsub.f32 %v282_v24, %v286_v20  ;;  %v399_v22 = vld [vmem:[%s1285_s1 + $0x28] sm:$0xff] }
 0x1ab   :  { %v299_v27 = vadd.f32 1e-05, %v295_v25  ;;  %v294_v28 = vmax.f32 %v290_v26, 0.0 }
 0x1ad   :  { %959 = vrsqrt.f32 %v299_v27  ;;  %v298_v29 = vadd.f32 1e-05, %v294_v28 }
 0x1af   :  { %961 = vrsqrt.f32 %v298_v29 }
 0x1b4   :  { %v956_v30 = vpop.eup %955 }
 0x1b5   :  { %v309_v31 = vmul.f32 %v956_v30, %v1170_v35 }
 0x1b6   :  { %v958_v32 = vpop.eup %957 }
 0x1b7   :  { %v313_v40 = vmul.f32 %v309_v31, %v261_v1  ;;  %v308_v43 = vmul.f32 %v958_v32, %v1161_v34 }
 0x1b9   :  { %324 = vrot.lane.b32.xlu0 %v313_v40, %s994_s24  ;;  %v312_v46 = vmul.f32 %v308_v43, %v260_v0 }
 0x1ba   :  { %v960_v47 = vpop.eup %959 }
 0x1bb   :  { %322 = vrot.lane.b32.xlu1 %v312_v46, %s994_s24  ;;  %v307_v48 = vmul.f32 %v960_v47, %v1152_v33 }
 0x1bc   :  { %v962_v49 = vpop.eup %961 }
 0x1bd   :  { %351 = vperm.xlu0 %945, %v309_v31   ;;  %v311_v50 = vmul.f32 %v307_v48, %v259_v6  ;;  %v306_v51 = vmul.f32 %v962_v49, %v1044_v7 }
 0x1bf   :  { %320 = vrot.lane.b32.xlu1 %v311_v50, %s994_s24  ;;  %v310_v52 = vmul.f32 %v306_v51, %v258_v14 }
 0x1c1   :  { %341 = vperm.xlu0 %945, %v307_v48  }
 0x1c3   :  { %318 = vrot.lane.b32.xlu1 %v310_v52, %s994_s24 }
 0x1c5   :  { %336 = vperm.xlu0 %945, %v306_v51  }
 0x1c7   :  { %346 = vperm.xlu1 %946, %v308_v43  }
 0x1c9   :  { %948 = vset.pattern.permute.xlu0 %v995_v53 }
 0x1cb   :  { %947 = vset.pattern.permute.xlu1 %v995_v53 }
 0x22b   :  { %v325_v56 = vpop.permute.xlu0 %324 }
 0x22c   :  { %v333_v58 = vsub.f32 %v1170_v35, %v325_v56 }
 0x22d   :  { %v323_v54 = vpop.permute.xlu1 %322 }
 0x22e   :  { %v332_v55 = vsub.f32 %v1161_v34, %v323_v54 }
 0x230   :  { %374 = vperm.xlu1 %947, %v332_v55  }
 0x231   :  { %v321_v57 = vpop.permute.xlu1 %320 }
 0x232   :  { %v331_v61 = vsub.f32 %v1152_v33, %v321_v57 }
 0x234   :  { %379 = vperm.xlu1 %947, %v333_v58  }
 0x235   :  { %v319_v59 = vpop.permute.xlu1 %318 }
 0x236   :  { %v330_v62 = vsub.f32 %v1044_v7, %v319_v59 }
 0x238   :  { %364 = vperm.xlu0 %948, %v330_v62   ;;  %369 = vperm.xlu1 %947, %v331_v61   ;;  %v352_v0 = vpop.permute.xlu0 %351 }
 0x239   :  { %v360_v3 = vmul.f32 %v352_v0, %v1194_v44  ;;  %v361_v35 = vmul.f32 %v352_v0, %v1196_v45 }
 0x23c   :  { %949 = vset.pattern.permute.xlu1 %v993_v60  ;;  %v342_v1 = vpop.permute.xlu0 %341 }
 0x23d   :  { %v356_v10 = vmul.f32 %v342_v1, %v1182_v38  ;;  %v357_v12 = vmul.f32 %v342_v1, %v1184_v39 }
 0x240   :  { %v337_v33 = vpop.permute.xlu0 %336 }
 0x241   :  { %v355_v13 = vmul.f32 %v337_v33, %v1180_v37  ;;  %v354_v45 = vmul.f32 %v337_v33, %v1178_v36  ;;  %v398_v36 = vld [vmem:[%s1285_s1 + $0x20] sm:$0xff] }
 0x242   :  { %v347_v34 = vpop.permute.xlu1 %346 }
 0x243   :  { %v359_v4 = vmul.f32 %v347_v34, %v1190_v42  ;;  %v358_v7 = vmul.f32 %v347_v34, %v1188_v41 }
 0x2ab   :  { %v375_v2 = vpop.permute.xlu1 %374 }
 0x2ac   :  { %v387_v6 = vadd.f32 %v375_v2, %v359_v4  ;;  %v386_v11 = vadd.f32 %v375_v2, %v358_v7 }
 0x2ae   :  { %v395_v16 = vmax.f32 %v387_v6, 0.0  ;;  %v394_v19 = vmax.f32 %v386_v11, 0.0 }
 0x2af   :  { %v380_v5 = vpop.permute.xlu1 %379 }
 0x2b0   :  { %v388_v8 = vadd.f32 %v380_v5, %v360_v3  ;;  %v389_v9 = vadd.f32 %v380_v5, %v361_v35 }
 0x2b2   :  { %v397_v14 = vmax.f32 %v389_v9, 0.0  ;;  %v396_v44 = vmax.f32 %v388_v8, 0.0 }
 0x2b3   :  { %v370_v15 = vpop.permute.xlu1 %369  ;;  %v365_v42 = vpop.permute.xlu0 %364 }
 0x2b4   :  { %v384_v17 = vadd.f32 %v370_v15, %v356_v10  ;;  %v385_v41 = vadd.f32 %v370_v15, %v357_v12  ;;  %v383_v18 = vadd.f32 %v365_v42, %v355_v13  ;;  %431 = vmatprep.subr.mxu1 %v397_v14  ;;  %v382_v20 = vadd.f32 %v365_v42, %v354_v45 }
 0x2b5   :  { %432 = vmatpush1.msra.mxu1 %v396_v44 }
 0x2b6   :  { %v392_v38 = vmax.f32 %v384_v17, 0.0  ;;  %v393_v21 = vmax.f32 %v385_v41, 0.0  ;;  %433 = vmatprep.subr.mxu1 %v395_v16  ;;  %v391_v39 = vmax.f32 %v383_v18, 0.0  ;;  %v390_v37 = vmax.f32 %v382_v20, 0.0  ;;  %v560_v20 = vld [vmem:[%s1285_s1 + $0x30] sm:$0xff] }
 0x2b7   :  { %434 = vmatpush1.msra.mxu1 %v394_v19 }
 0x2b8   :  { %435 = vmatprep.subr.mxu1 %v393_v21 }
 0x2b9   :  { %436 = vmatpush1.msra.mxu1 %v392_v38 }
 0x2ba   :  { %437 = vmatprep.subr.mxu1 %v391_v39 }
 0x2bb   :  { %438 = vmatpush1.msra.mxu1 %v390_v37 }
 0x2bc   :  { %895 = vmatmul.mubr.msk.f32.vlgmr.msra.gmra.mxu1 %vm400_vm1, %v398_v36 }
 0x2bd   :  { %477 = vmatprep.mubr.f32.mxu1 %v996_v63 }
 0x2c0   :  { %896 = vmatmul.mubr.msk.f32.gmra.mxu1 %vm400_vm1, %v399_v22 }
 0x2c1   :  { %628 = vmatprep.mubr.f32.mxu1 %v996_v63 }
 0x37c   :  { %v473_v23 = vpop.f32.mrf.mxu1 }
 0x37d   :  { %v492_v40 = vmul.f32 %v473_v23, %v473_v23 }
 0x37e   :  { %v475_v24 = vpop.f32.mrf.mxu1 }
 0x37f   :  { %v484_v25 = vadd.f32 %v475_v24, %v473_v23  ;;  %v493_v31 = vmul.f32 %v475_v24, %v475_v24 }
 0x380   :  { %v479_v26 = vpop.f32.mrf.mxu1 }
 0x381   :  { %485 = vadd.xlane.f32.xlu0 %v484_v25  ;;  %v494_v29 = vmul.f32 %v479_v26, %v479_v26  ;;  %v496_v43 = vadd.f32 %v493_v31, %v492_v40 }
 0x382   :  { %v481_v27 = vpop.f32.mrf.mxu1 }
 0x383   :  { %v487_v28 = vadd.f32 %v481_v27, %v479_v26  ;;  %v495_v30 = vmul.f32 %v481_v27, %v481_v27 }
 0x385   :  { %488 = vadd.xlane.f32.xlu1 %v487_v28  ;;  %v499_v32 = vadd.f32 %v495_v30, %v494_v29 }
 0x387   :  { %500 = vadd.xlane.f32.xlu0 %v499_v32 }
 0x389   :  { %497 = vadd.xlane.f32.xlu1 %v496_v43 }
 0x40a   :  { %v486_v46 = vpop.xlane.xlu0 %485 }
 0x40b   :  { %v490_v48 = vmul.f32 0.00390625, %v486_v46 }
 0x40d   :  { %v504_v55 = vmul.f32 %v490_v48, %v490_v48 }
 0x40e   :  { %v489_v47 = vpop.xlane.xlu1 %488 }
 0x40f   :  { %v491_v49 = vmul.f32 0.00390625, %v489_v47 }
 0x410   :  { %v501_v50 = vpop.xlane.xlu0 %500 }
 0x411   :  { %v505_v51 = vmul.f32 %v491_v49, %v491_v49  ;;  %v503_v52 = vmul.f32 0.00390625, %v501_v50 }
 0x412   :  { %v498_v54 = vpop.xlane.xlu1 %497 }
 0x413   :  { %v507_v56 = vsub.f32 %v503_v52, %v505_v51  ;;  %v502_v57 = vmul.f32 0.00390625, %v498_v54 }
 0x415   :  { %v509_v58 = vmax.f32 %v507_v56, 0.0  ;;  %v506_v59 = vsub.f32 %v502_v57, %v504_v55  ;;  %v673_v55 = vld [vmem:[%s1285_s1 + $0x38] sm:$0xf] }
 0x417   :  { %v511_v61 = vadd.f32 1e-05, %v509_v58  ;;  %v508_v62 = vmax.f32 %v506_v59, 0.0 }
 0x419   :  { %963 = vrsqrt.f32 %v511_v61  ;;  %v510_v0 = vadd.f32 1e-05, %v508_v62 }
 0x41b   :  { %965 = vrsqrt.f32 %v510_v0 }
 0x426   :  { %v964_v34 = vpop.eup %963 }
 0x427   :  { %v515_v1 = vmul.f32 %v964_v34, %v399_v22 }
 0x428   :  { %v966_v2 = vpop.eup %965 }
 0x429   :  { %v517_v3 = vmul.f32 %v515_v1, %v491_v49  ;;  %v514_v35 = vmul.f32 %v966_v2, %v398_v36 }
 0x42b   :  { %522 = vrot.lane.b32.xlu0 %v517_v3, %s994_s24  ;;  %v516_v4 = vmul.f32 %v514_v35, %v490_v48 }
 0x42d   :  { %520 = vrot.lane.b32.xlu1 %v516_v4, %s994_s24 }
 0x431   :  { %535 = vperm.xlu1 %949, %v515_v1  }
 0x435   :  { %530 = vperm.xlu1 %949, %v514_v35  }
 0x439   :  { %950 = vset.pattern.permute.xlu1 %v995_v53 }
 0x49d   :  { %v523_v33 = vpop.permute.xlu0 %522 }
 0x49e   :  { %v527_v7 = vsub.f32 %v399_v22, %v523_v33 }
 0x49f   :  { %v521_v5 = vpop.permute.xlu1 %520 }
 0x4a0   :  { %v526_v6 = vsub.f32 %v398_v36, %v521_v5  ;;  %549 = vperm.xlu0 %948, %v527_v7  }
 0x4a2   :  { %544 = vperm.xlu1 %950, %v526_v6  }
 0x4a6   :  { %951 = vset.pattern.permute.xlu1 %v993_v60 }
 0x4ac   :  { %v536_v8 = vpop.permute.xlu1 %535 }
 0x4ad   :  { %v540_v10 = vmul.f32 %v536_v8, %v479_v26  ;;  %v541_v11 = vmul.f32 %v536_v8, %v481_v27 }
 0x4b0   :  { %v531_v9 = vpop.permute.xlu1 %530 }
 0x4b1   :  { %v538_v13 = vmul.f32 %v531_v9, %v473_v23  ;;  %v539_v14 = vmul.f32 %v531_v9, %v475_v24 }
 0x51b   :  { %v550_v12 = vpop.permute.xlu0 %549 }
 0x51c   :  { %v554_v44 = vadd.f32 %v550_v12, %v540_v10  ;;  %v555_v45 = vadd.f32 %v550_v12, %v541_v11  ;;  %v792_v11 = vld [vmem:[%s1285_s1 + $0x40] sm:$0xf] }
 0x51d   :  { %v545_v15 = vpop.permute.xlu1 %544 }
 0x51e   :  { %v558_v42 = vmax.f32 %v554_v44, 0.0  ;;  %v559_v16 = vmax.f32 %v555_v45, 0.0  ;;  %v552_v17 = vadd.f32 %v545_v15, %v538_v13  ;;  %v553_v41 = vadd.f32 %v545_v15, %v539_v14  ;;  %v793_v14 = vld [vmem:[%s1285_s1 + $0x40] sm:$0x1]  ;;  %s998_s1 = smov [#allocation2]  }
 0x51f   :  { %s851_s9 = sshll.u32 %s998_s1, 4  ;;  %s852_s9 = int_to_ptr.vmem [resolvable:$true] %s851_s9 }
 0x520   :  { %v556_v18 = vmax.f32 %v552_v17, 0.0  ;;  %v557_v19 = vmax.f32 %v553_v41, 0.0  ;;  %592 = vmatprep.subr.mxu1 %v559_v16  ;;  %s971_s10 = scalar_lea.vmem %s852_s9, 32  ;;  %p976_p1 = scmp.lt.s32.totalorder %s852_s9, %s852_s9 }
 0x521   :  { %593 = vmatpush1.msra.mxu1 %v558_v42  ;;  %p972_p0 = scmp.ne.s32.totalorder %s852_s9, %s971_s10  ;;  %p977_p2 = scmp.lt.s32.totalorder %s971_s10, %s971_s10 }
 0x522   :  { %594 = vmatprep.subr.mxu1 %v557_v19 }
 0x523   :  { %595 = vmatpush1.msra.mxu1 %v556_v18  ;;  %p978_p3 = por %p977_p2, %p976_p1 }
 0x524   :  { %897 = vmatmul.mubr.msk.f32.vlgmr.msra.gmra.mxu1 %vm48_vm0, %v560_v20 }
 0x525   :  { %742 = vmatprep.mubr.f32.mxu1 %v996_v63  ;;  %p979_p4 = pnand %p978_p3, %p972_p0 }
 0x5e4   :  { %v630_v38 = vpop.f32.mrf.mxu1 }
 0x5e5   :  { %v639_v37 = vmul.f32 %v630_v38, %v630_v38 }
 0x5e6   :  { %v632_v21 = vpop.f32.mrf.mxu1 }
 0x5e7   :  { %v635_v39 = vadd.f32 %v632_v21, %v630_v38  ;;  %v640_v36 = vmul.f32 %v632_v21, %v632_v21 }
 0x5e9   :  { %636 = vadd.xlane.f32.xlu0 %v635_v39  ;;  %v641_v22 = vadd.f32 %v640_v36, %v639_v37 }
 0x5eb   :  { %642 = vadd.xlane.f32.xlu1 %v641_v22 }
 0x672   :  { %v637_v23 = vpop.xlane.xlu0 %636 }
 0x673   :  { %v638_v24 = vmul.f32 0.00390625, %v637_v23 }
 0x674   :  { %v643_v25 = vpop.xlane.xlu1 %642 }
 0x675   :  { %v645_v26 = vmul.f32 %v638_v24, %v638_v24  ;;  %v644_v27 = vmul.f32 0.00390625, %v643_v25  ;;  %v997_v25 = vmov 1966171168  }
 0x677   :  { %v646_v28 = vsub.f32 %v644_v27, %v645_v26  ;;  %v826_v26 = vunpack.c.l.s4 %v997_v25  ;;  %v828_v27 = vlaneseq }
 0x679   :  { %v647_v29 = vmax.f32 %v646_v28, 0.0  ;;  %vm842_vm4 = vcmp.lt.s32.totalorder %v828_v27, 256 }
 0x67b   :  { %v648_v30 = vadd.f32 1e-05, %v647_v29 }
 0x67d   :  { %967 = vrsqrt.f32 %v648_v30  ;;  %v827_v30 = vunpack.c.0.s8 %v826_v26 }
 0x68a   :  { %v968_v31 = vpop.eup %967 }
 0x68b   :  { %v650_v32 = vmul.f32 %v968_v31, %v560_v20  ;;  %v829_v31 = vshrl.u32 %v828_v27, 7 }
 0x68d   :  { %659 = vperm.xlu1 %951, %v650_v32   ;;  %v651_v63 = vmul.f32 %v650_v32, %v638_v24 }
 0x68f   :  { %653 = vrot.lane.b32.xlu0 %v651_v63, %s994_s24 }
 0x701   :  { %v654_v40 = vpop.permute.xlu0 %653 }
 0x702   :  { %v656_v43 = vsub.f32 %v560_v20, %v654_v40 }
 0x704   :  { %666 = vperm.xlu0 %948, %v656_v43  }
 0x708   :  { %953 = vset.pattern.permute.xlu0 %v993_v60  ;;  %v660_v46 = vpop.permute.xlu1 %659 }
 0x709   :  { %v662_v47 = vmul.f32 %v660_v46, %v630_v38  ;;  %v663_v48 = vmul.f32 %v660_v46, %v632_v21 }
 0x77f   :  { %v667_v49 = vpop.permute.xlu0 %666 }
 0x780   :  { %v669_v50 = vadd.f32 %v667_v49, %v662_v47  ;;  %v670_v51 = vadd.f32 %v667_v49, %v663_v48  ;;  %v830_v47 = vsub.s32 %v827_v30, %v829_v31 }
 0x782   :  { %v671_v52 = vmax.f32 %v669_v50, 0.0  ;;  %v672_v54 = vmax.f32 %v670_v51, 0.0 }
 0x784   :  { %708 = vmatprep.subr.mxu1 %v672_v54 }
 0x785   :  { %709 = vmatpush1.msra.mxu1 %v671_v52 }
 0x786   :  { %898 = vmatmul.mubr.msk.f32.vlgmr.msra.gmra.mxu1 %vm674_vm2, %v673_v55 }
 0x846   :  { %v744_v56 = vpop.f32.mrf.mxu1 }
 0x847   :  { %v756_v57 = vmul.f32 %v744_v56, %v744_v56  ;;  %v750_v61 = vsel %vm749_vm3, %v744_v56, 0.0 }
 0x848   :  { %v746_v60 = vpop.f32.mrf.mxu1 }
 0x849   :  { %v751_v58 = vsel %vm749_vm3, %v746_v60, 0.0  ;;  %v757_v59 = vmul.f32 %v746_v60, %v746_v60  ;;  %v758_v0 = vsel %vm749_vm3, %v756_v57, 0.0 }
 0x84a   :  { %v752_v62 = vadd.f32 %v751_v58, %v750_v61 }
 0x84b   :  { %v759_v34 = vsel %vm749_vm3, %v757_v59, 0.0 }
 0x84c   :  { %753 = vadd.xlane.f32.xlu1 %v752_v62  ;;  %v760_v1 = vadd.f32 %v759_v34, %v758_v0 }
 0x84e   :  { %761 = vadd.xlane.f32.xlu0 %v760_v1 }
 0x8d5   :  { %v754_v2 = vpop.xlane.xlu1 %753 }
 0x8d6   :  { %v755_v3 = vmul.f32 0.00390625, %v754_v2 }
 0x8d7   :  { %v762_v35 = vpop.xlane.xlu0 %761 }
 0x8d8   :  { %v764_v4 = vmul.f32 %v755_v3, %v755_v3  ;;  %v763_v33 = vmul.f32 0.00390625, %v762_v35 }
 0x8da   :  { %v765_v7 = vsub.f32 %v763_v33, %v764_v4 }
 0x8dc   :  { %v766_v5 = vmax.f32 %v765_v7, 0.0 }
 0x8de   :  { %v767_v6 = vadd.f32 1e-05, %v766_v5 }
 0x8e0   :  { %969 = vrsqrt.f32 %v767_v6 }
 0x8ed   :  { %v970_v8 = vpop.eup %969 }
 0x8ee   :  { %v769_v9 = vmul.f32 %v970_v8, %v673_v55 }
 0x8f0   :  { %778 = vperm.xlu1 %951, %v769_v9   ;;  %v770_v10 = vmul.f32 %v769_v9, %v755_v3 }
 0x8f2   :  { %772 = vrot.lane.b32.xlu0 %v770_v10, %s994_s24 }
 0x8f4   :  { %952 = vset.pattern.permute.xlu1 %v995_v53 }
 0x8f6   :  { %796 = vperm.xlu0 %953, %v792_v11  }
 0x8fa   :  { %954 = vset.pattern.permute.xlu0 %v995_v53 }
 0x964   :  { %v773_v12 = vpop.permute.xlu0 %772 }
 0x965   :  { %v775_v13 = vsub.f32 %v673_v55, %v773_v12 }
 0x967   :  { %785 = vperm.xlu1 %952, %v775_v13  }
 0x96b   :  { %817 = vperm.xlu1 %952, %v793_v14   ;;  %v779_v44 = vpop.permute.xlu1 %778 }
 0x96c   :  { %v781_v45 = vmul.f32 %v779_v44, %v744_v56  ;;  %v782_v15 = vmul.f32 %v779_v44, %v746_v60 }
 0x971   :  { %v797_v41 = vpop.permute.xlu0 %796 }
 0x9e2   :  { %v786_v42 = vpop.permute.xlu1 %785 }
 0x9e3   :  { %v788_v16 = vadd.f32 %v786_v42, %v781_v45  ;;  %v789_v17 = vadd.f32 %v786_v42, %v782_v15 }
 0x9e5   :  { %v790_v18 = vmax.f32 %v788_v16, 0.0  ;;  %v791_v19 = vmax.f32 %v789_v17, 0.0 }
 0x9e6   :  { %v818_v46 = vpop.permute.xlu1 %817 }
 0x9e7   :  { %v799_v20 = vmul.f32 %v797_v41, %v790_v18  ;;  %v800_v38 = vmul.f32 %v797_v41, %v791_v19 }
 0x9e9   :  { %v801_v53 = vsel %vm749_vm3, %v799_v20, 0.0  ;;  %v808_v21 = vsel %vm749_vm3, %v800_v38, 0.0 }
 0x9ea   :  { %v802_v39 = vrot.slane %v801_v53, 4  ;;  %v809_v37 = vrot.slane %v808_v21, 4 }
 0x9ec   :  { %v803_v36 = vadd.f32 %v802_v39, %v801_v53  ;;  %v810_v22 = vadd.f32 %v809_v37, %v808_v21 }
 0x9ee   :  { %v804_v23 = vrot.slane %v803_v36, 2  ;;  %v811_v24 = vrot.slane %v810_v22, 2 }
 0x9f0   :  { %v805_v28 = vadd.f32 %v804_v23, %v803_v36  ;;  %v812_v29 = vadd.f32 %v811_v24, %v810_v22 }
 0x9f2   :  { %v806_v32 = vrot.slane %v805_v28, 1  ;;  %v813_v63 = vrot.slane %v812_v29, 1 }
 0x9f4   :  { %v807_v40 = vadd.f32 %v806_v32, %v805_v28  ;;  %v814_v43 = vadd.f32 %v813_v63, %v812_v29 }
 0x9f6   :  { %v820_v48 = vadd.f32 %v818_v46, %v807_v40  ;;  %v821_v49 = vadd.f32 %v818_v46, %v814_v43 }
 0x9f8   :  { %v824_v50 = vcombine.low %v820_v48, %v821_v49 }
 0x9fa   :  { %v831_v51 = vrot.slane %v824_v50, %v830_v47 }
 0x9fc   :  { %v838_v52 = vrot.slane %v831_v51, %v830_v47 }
 0x9fe   :  { %844 = vst.msk [vmem:[#allocation2] sm:$0x3] %vm842_vm4, %v838_v52 }
 0x9ff   :  { %982 = shalt.err (!%p979_p4)
}
 0xa00   :  { %854 = dma.vmem_to_hbm [thread:$0]  %s852_s9, 32, %s1286_s2, [#allocation3]  }
 0xa01   :  { %991 = dma.done.wait [#allocation3], 32  }
 0xa02   :  { %992 = vsyncadd [#allocation3], 4294967264 }
 0xa03   :  { %858 = vsyncpa [#allocation3], 1 }

</bundles_post_ra>
